<compile_context>
chip_gen: v5e
topology: v5e:2x2
jax: 0.10.0
libtpu: 0.0.40
codegen_flags: <defaults>
</compile_context>

<pallas_src>
import jax
import jax.numpy as jnp
from jax.experimental import pallas as pl
from jax.experimental.pallas import tpu as pltpu

D = 64  # fixed by the module (repeat(1, 1, 64) forces the feature dim to 64)


def _ws_readout_kernel(seq_ref, q_ref, o_ref):
    # seq_ref: (TB, N, D), q_ref: (TB, 1, D), o_ref: (TB, D)
    seq = seq_ref[...].astype(jnp.float32)     # (TB, N, D)
    q = q_ref[...].astype(jnp.float32)         # (TB, 1, D)

    # Attention scores over the node axis, on the MXU: (TB, N, 1).
    sim = jnp.einsum("bnd,bqd->bnq", seq, q,
                     preferred_element_type=jnp.float32)

    # Numerically-stable softmax over nodes (dim=1 in the torch layout).
    m = jnp.max(sim, axis=1, keepdims=True)               # (TB, 1, 1)
    e = jnp.exp(sim - m)                                   # (TB, N, 1)
    denom = jnp.sum(e, axis=1, keepdims=True)              # (TB, 1, 1)
    w = e * pl.reciprocal(denom, approx=False)             # (TB, N, 1)

    # Weighted sum over nodes, on the MXU: (TB, 1, D).
    out = jnp.einsum("bnq,bnd->bqd", w, seq,
                     preferred_element_type=jnp.float32)

    # Sublane/lane-dense (TB, D) store.
    o_ref[...] = out[:, 0, :].astype(o_ref.dtype)


def _round_up(x, m):
    return ((x + m - 1) // m) * m


def ws_readout(seq, query, *, block_b=None):
    """seq: (B, N, 64), query: (B, 1, 64) -> (B, 64)."""
    B, N, d = seq.shape
    assert d == D, f"feature dim must be {D}"
    assert query.shape == (B, 1, D)

    if block_b is None:
        # Target ~4 MiB seq blocks per grid step (double-buffered ~8 MiB):
        # safe on v5e's 16 MiB default scoped VMEM, v6e's 32 MiB, v7x's 64 MiB.
        row_bytes = N * D * seq.dtype.itemsize
        block_b = max(8, min(1024, (4 * 1024 * 1024) // max(row_bytes, 1)))
    block_b = min(block_b, _round_up(B, 8))
    block_b = max(8, (block_b // 8) * 8)   # multiple of 8 sublanes

    # Pad the batch to a multiple of block_b (zero padding is numerically safe
    # here and the padded rows are sliced off below).
    B_pad = _round_up(B, block_b)
    if B_pad != B:
        seq = jnp.pad(seq, ((0, B_pad - B), (0, 0), (0, 0)))
        query = jnp.pad(query, ((0, B_pad - B), (0, 0), (0, 0)))

    grid = (B_pad // block_b,)

    out = pl.pallas_call(
        _ws_readout_kernel,
        out_shape=jax.ShapeDtypeStruct((B_pad, D), seq.dtype),
        grid_spec=pltpu.PrefetchScalarGridSpec(
            num_scalar_prefetch=0,
            grid=grid,
            in_specs=[
                # TODO(synk): add an N-tiled (flash-style running-softmax) path
                # for very large N; currently one (block_b, N, D) tile must fit
                # in a single VMEM block.
                pl.BlockSpec((block_b, N, D), lambda b: (b, 0, 0)),
                pl.BlockSpec((block_b, 1, D), lambda b: (b, 0, 0)),
            ],
            out_specs=pl.BlockSpec((block_b, D), lambda b: (b, 0)),
        ),
        compiler_params=pltpu.CompilerParams(
            dimension_semantics=("parallel",)),
    )(seq, query)

    return out[:B]


def ws_readout_reference(seq, query):
    """Pure-JAX reference mirroring the PyTorch forward."""
    q_t = jnp.transpose(query, (0, 2, 1))            # (B, D, 1)
    sim = jnp.matmul(seq, q_t)                       # (B, N, 1)
    sim = jax.nn.softmax(sim, axis=1)                # softmax over nodes
    sim = jnp.tile(sim, (1, 1, D))                   # (B, N, D)
    out = jnp.sum(seq * sim, axis=1)                 # (B, D)
    return out


if __name__ == "__main__":
    key = jax.random.PRNGKey(0)
    k1, k2, k3, k4 = jax.random.split(key, 4)

    # Small shapes consistent with the module.
    B, N = 2, 8
    seq = jax.random.normal(k1, (B, N, D), dtype=jnp.float32)
    query = jax.random.normal(k2, (B, 1, D), dtype=jnp.float32)

    out = jax.block_until_ready(ws_readout(seq, query))
    ref = ws_readout_reference(seq, query)
    assert out.shape == (B, D)
    assert jnp.allclose(out, ref, atol=1e-5, rtol=1e-5), (
        f"max abs err {jnp.max(jnp.abs(out - ref))}")

    # Exercise the multi-step grid + batch-padding path explicitly.
    B2, N2 = 10, 16
    seq2 = jax.random.normal(k3, (B2, N2, D), dtype=jnp.float32)
    query2 = jax.random.normal(k4, (B2, 1, D), dtype=jnp.float32)
    out2 = jax.block_until_ready(ws_readout(seq2, query2, block_b=8))
    ref2 = ws_readout_reference(seq2, query2)
    assert out2.shape == (B2, D)
    assert jnp.allclose(out2, ref2, atol=1e-5, rtol=1e-5), (
        f"max abs err {jnp.max(jnp.abs(out2 - ref2))}")

    print("KERNEL_OK")
</pallas_src>

<mosaic_0001>
module attributes {stable_mosaic.version = 11 : i64} {
  func.func @_ws_readout_kernel(%arg0: i32, %arg1: memref<8x8x64xf32, #tpu.memory_space<vmem>>, %arg2: memref<8x1x64xf32, #tpu.memory_space<vmem>>, %arg3: memref<8x64xf32, #tpu.memory_space<vmem>>) attributes {dimension_semantics = [#tpu.dimension_semantics<parallel>], iteration_bounds = array<i64: 1>, scalar_prefetch = 0 : i64, scratch_operands = 0 : i64, tpu.core_type = #tpu.core_type<tc>, window_params = [{transform_indices = @transform_0, window_bounds = array<i64: 8, 8, 64>}, {transform_indices = @transform_1, window_bounds = array<i64: 8, 1, 64>}, {transform_indices = @transform_2, window_bounds = array<i64: 8, 64>}]} {
    %c0 = arith.constant 0 : index
    %c0_0 = arith.constant 0 : index
    %c0_1 = arith.constant 0 : index
    %0 = vector.load %arg1[%c0, %c0_0, %c0_1] : memref<8x8x64xf32, #tpu.memory_space<vmem>>, vector<8x8x64xf32>
    %c0_2 = arith.constant 0 : index
    %c0_3 = arith.constant 0 : index
    %c0_4 = arith.constant 0 : index
    %1 = vector.load %arg2[%c0_2, %c0_3, %c0_4] : memref<8x1x64xf32, #tpu.memory_space<vmem>>, vector<8x1x64xf32>
    "tpu.trace_start"() <{level = 10 : i32, message = "bnd,bqd->bnq"}> : () -> ()
    %cst = arith.constant dense<0.000000e+00> : vector<8x8x1xf32>
    %2 = tpu.matmul %0, %1, %cst {dimension_numbers = #tpu.dot_dimension_numbers<[2], [2], [1], [1], [0, 0, 0, 1, 1, 1], [0], [0]>} : vector<8x8x64xf32>, vector<8x1x64xf32>, vector<8x8x1xf32> -> vector<8x8x1xf32>
    "tpu.trace_stop"() : () -> ()
    %cst_5 = arith.constant dense<0xFF800000> : vector<8x1xf32>
    %3 = vector.multi_reduction <maximumf>, %2, %cst_5 [1] : vector<8x8x1xf32> to vector<8x1xf32>
    %4 = vector.shape_cast %3 : vector<8x1xf32> to vector<8x1x1xf32>
    %5 = vector.broadcast %4 : vector<8x1x1xf32> to vector<8x8x1xf32>
    %6 = arith.subf %2, %5 : vector<8x8x1xf32>
    %7 = math.exp %6 : vector<8x8x1xf32>
    %cst_6 = arith.constant dense<0.000000e+00> : vector<8x1xf32>
    %8 = vector.multi_reduction <add>, %7, %cst_6 [1] : vector<8x8x1xf32> to vector<8x1xf32>
    %9 = vector.shape_cast %8 : vector<8x1xf32> to vector<8x1x1xf32>
    %10 = tpu.reciprocal %9 : vector<8x1x1xf32> -> vector<8x1x1xf32>
    %11 = vector.broadcast %10 : vector<8x1x1xf32> to vector<8x8x1xf32>
    %12 = arith.mulf %7, %11 : vector<8x8x1xf32>
    "tpu.trace_start"() <{level = 10 : i32, message = "bnq,bnd->bqd"}> : () -> ()
    %cst_7 = arith.constant dense<0.000000e+00> : vector<8x1x64xf32>
    %13 = tpu.matmul %12, %0, %cst_7 {dimension_numbers = #tpu.dot_dimension_numbers<[1], [1], [2], [2], [0, 0, 0, 2, 1, 2], [0], [0]>} : vector<8x8x1xf32>, vector<8x8x64xf32>, vector<8x1x64xf32> -> vector<8x1x64xf32>
    "tpu.trace_stop"() : () -> ()
    %14 = vector.shape_cast %13 : vector<8x1x64xf32> to vector<8x64xf32>
    %c0_8 = arith.constant 0 : index
    %c0_9 = arith.constant 0 : index
    %15 = vector.load %arg3[%c0_8, %c0_9] : memref<8x64xf32, #tpu.memory_space<vmem>>, vector<8x64xf32>
    tpu.vector_store %arg3[%c0_8, %c0_9], %14 {strides = array<i32>} : memref<8x64xf32, #tpu.memory_space<vmem>>, vector<8x64xf32>,
    return
  }
  func.func @transform_0(%arg0: i32) -> (i32, i32, i32) {
    %c0_i32 = arith.constant 0 : i32
    %c0_i32_0 = arith.constant 0 : i32
    %c0_i32_1 = arith.constant 0 : i32
    return %arg0, %c0_i32, %c0_i32_0 : i32, i32, i32
  }
  func.func @transform_1(%arg0: i32) -> (i32, i32, i32) {
    %c0_i32 = arith.constant 0 : i32
    %c0_i32_0 = arith.constant 0 : i32
    %c0_i32_1 = arith.constant 0 : i32
    return %arg0, %c0_i32, %c0_i32_0 : i32, i32, i32
  }
  func.func @transform_2(%arg0: i32) -> (i32, i32) {
    %c0_i32 = arith.constant 0 : i32
    %c0_i32_0 = arith.constant 0 : i32
    return %arg0, %c0_i32 : i32, i32
  }
}

</mosaic_0001>

<bundles_post_ra>
// kernel: tpu_custom_call.1
= control target key start
LH: loop header
LB: loop body
LE: loop exit
PB: predicated region body
PF: predicated region fallthrough
CT: control target
= control target key end

     0   :  { %7 = vsyncpa [#allocation3], 0  ;;  %s1200_s0 = inlined_call_operand.hbm [shape: f32[8,8,64], index: 0, kind: input, shape index: {}]   ;;  %s1201_s1 = inlined_call_operand.hbm [shape: f32[8,1,64], index: 1, kind: input, shape index: {}]   ;;  %s1202_s2 = inlined_call_operand.hbm [shape: f32[8,64], index: 2, kind: output, shape index: {}]  }
   0x1   :  { %8 = vsyncpa [#allocation6], 0 }
   0x2   :  { %9 = vsyncpa [#allocation4], 0  ;;  %s14_s11 = sshll.u32 %s1200_s0, 4  ;;  %s998_s12 = smov [#allocation2]   ;;  %s15_s11 = int_to_ptr.hbm [resolvable:$true] %s14_s11 }
   0x3   :  { %s16_s13 = sshll.u32 %s998_s12, 4  ;;  %s27_s16 = sshll.u32 %s1201_s1, 4  ;;  %s17_s13 = int_to_ptr.vmem [resolvable:$true] %s16_s13  ;;  %s28_s16 = int_to_ptr.hbm [resolvable:$true] %s27_s16 }
   0x4   :  { %s999_s17 = smov 128   ;;  %s1000_s18 = smov 8  }
   0x5   :  { %22 = dma.hbm_to_vmem [thread:$0]  %s15_s11, 1024, %s17_s13, [#allocation3], %s999_s17, %s999_s17, %s1000_s18  }
   0x6   :  { %s1001_s19 = smov [#allocation5]   ;;  %s1002_s21 = smov 16  }
   0x7   :  { %s29_s20 = sshll.u32 %s1001_s19, 4  ;;  %s1003_s22 = smov 1   ;;  %s30_s20 = int_to_ptr.vmem [resolvable:$true] %s29_s20 }
   0x8   :  { %35 = dma.hbm_to_vmem [thread:$0]  %s28_s16, 128, %s30_s20, [#allocation6], %s1002_s21, %s1002_s21, %s1003_s22  }
   0x9   :  { %992 = dma.done.wait [#allocation3], 1024  }
   0xa   :  { %993 = vsyncadd [#allocation3], 4294966272 }
   0xb   :  { %994 = dma.done.wait [#allocation6], 128  }
   0xc   :  { %995 = vsyncadd [#allocation6], 4294967168  ;;  %v50_v0 = vld [vmem:[#allocation2 + $0x30] sm:$0xff]  ;;  %v880_v1 = vld [vmem:[#allocation5 + $0x6] ss:$0 sm:$0xff]  ;;  %vm64_vm0 = vcmask 523264  }
   0xd   :  { %v46_v2 = vld [vmem:[#allocation2 + $0x10] sm:$0xff]  ;;  %v881_v3 = vld [vmem:[#allocation5 + $0x2] ss:$0 sm:$0xff]  ;;  %v106_v4 = vmul.f32 %v880_v1, %v50_v0  ;;  %v882_v6 = vld [vmem:[#allocation5] ss:$0 sm:$0xff]  ;;  %vm117_vm1 = vcmask 7168  }
   0xe   :  { %v44_v5 = vld [vmem:[#allocation2] sm:$0xff]  ;;  %535 = vmatpush.msra.mxu2 %v46_v2  ;;  %v78_v7 = vmul.f32 %v881_v3, %v46_v2  ;;  %v51_v8 = vld [vmem:[#allocation2 + $0x38] sm:$0xff]  ;;  %v45_v15 = vld [vmem:[#allocation2 + $0x8] sm:$0xff]  ;;  %s1004_s0 = smov [#allocation7]   ;;  %s853_s25 = sshll.u32 %s1202_s2, 4  ;;  %s854_s25 = int_to_ptr.hbm [resolvable:$true] %s853_s25 }
   0xf   :  { %v883_v9 = vld [vmem:[#allocation5 + $0x7] ss:$0 sm:$0xff]  ;;  %425 = vmatpush.msra.mxu0 %v44_v5  ;;  %v107_v10 = vsel %vm64_vm0, %v106_v4, 0.0  ;;  %v63_v11 = vmul.f32 %v882_v6, %v44_v5  ;;  %v47_v12 = vld [vmem:[#allocation2 + $0x18] sm:$0xff]  ;;  %v884_v13 = vld [vmem:[#allocation5 + $0x3] ss:$0 sm:$0xff]  ;;  %480 = vmatpush.msra.mxu1 %v45_v15 }
  0x10   :  { %755 = vmatpush.msrb.mxu2 %v50_v0  ;;  %108 = vadd.xlane.f32.xlu2 %v107_v10  ;;  %v79_v14 = vsel %vm64_vm0, %v78_v7, 0.0  ;;  %v885_v16 = vld [vmem:[#allocation5 + $0x1] ss:$0 sm:$0xff]  ;;  %v113_v18 = vmul.f32 %v883_v9, %v51_v8  ;;  %v85_v19 = vmul.f32 %v884_v13, %v47_v12  ;;  %v49_v21 = vld [vmem:[#allocation2 + $0x28] sm:$0xff]  ;;  %v886_v25 = vld [vmem:[#allocation5 + $0x4] ss:$0 sm:$0xff] }
  0x11   :  { %590 = vmatpush.msra.mxu3 %v47_v12  ;;  %80 = vadd.xlane.f32.xlu0 %v79_v14  ;;  %v65_v17 = vsel %vm64_vm0, %v63_v11, 0.0  ;;  %v48_v20 = vld [vmem:[#allocation2 + $0x20] sm:$0xff]  ;;  %v71_v22 = vmul.f32 %v885_v16, %v45_v15  ;;  %s851_s1 = sshll.u32 %s1004_s0, 4  ;;  %s852_s1 = int_to_ptr.vmem [resolvable:$true] %s851_s1 }
  0x12   :  { %66 = vadd.xlane.f32.xlu1 %v65_v17  ;;  %645 = vmatpush.msrb.mxu0 %v48_v20  ;;  %v114_v23 = vsel %vm64_vm0, %v113_v18, 0.0  ;;  %v86_v24 = vsel %vm64_vm0, %v85_v19, 0.0  ;;  %v887_v27 = vld [vmem:[#allocation5 + $0x5] ss:$0 sm:$0xff]  ;;  %v92_v28 = vmul.f32 %v886_v25, %v48_v20 }
  0x13   :  { %810 = vmatpush.msrb.mxu3 %v51_v8  ;;  %700 = vmatpush.msrb.mxu1 %v49_v21  ;;  %v72_v26 = vsel %vm64_vm0, %v71_v22, 0.0  ;;  %v99_v29 = vmul.f32 %v887_v27, %v49_v21 }
  0x14   :  { %v93_v30 = vsel %vm64_vm0, %v92_v28, 0.0 }
  0x15   :  { %v100_v31 = vsel %vm64_vm0, %v99_v29, 0.0 }
  0x18   :  { %115 = vadd.xlane.f32.xlu2 %v114_v23 }
  0x19   :  { %87 = vadd.xlane.f32.xlu0 %v86_v24 }
  0x1a   :  { %73 = vadd.xlane.f32.xlu1 %v72_v26 }
  0x21   :  { %94 = vadd.xlane.f32.xlu0 %v93_v30 }
  0x22   :  { %101 = vadd.xlane.f32.xlu1 %v100_v31 }
  0x83   :  { %v109_v32 = vpop.xlane.xlu2 %108 }
  0x84   :  { %v160_v33 = vsel %vm117_vm1, %v109_v32, -inf  ;;  %v81_v34 = vpop.xlane.xlu0 %80 }
  0x85   :  { %v161_v35 = vrot.slane %v160_v33, 4  ;;  %v132_v36 = vsel %vm117_vm1, %v81_v34, -inf  ;;  %v67_v37 = vpop.xlane.xlu1 %66 }
  0x86   :  { %v133_v38 = vrot.slane %v132_v36, 4  ;;  %v118_v39 = vsel %vm117_vm1, %v67_v37, -inf }
  0x87   :  { %v162_v40 = vmax.f32 %v160_v33, %v161_v35  ;;  %v119_v41 = vrot.slane %v118_v39, 4 }
  0x88   :  { %v134_v42 = vmax.f32 %v132_v36, %v133_v38 }
  0x89   :  { %v163_v43 = vrot.slane %v162_v40, 2  ;;  %v120_v44 = vmax.f32 %v118_v39, %v119_v41 }
  0x8a   :  { %v135_v45 = vrot.slane %v134_v42, 2 }
  0x8b   :  { %v164_v46 = vmax.f32 %v162_v40, %v163_v43  ;;  %v121_v47 = vrot.slane %v120_v44, 2  ;;  %v116_v48 = vpop.xlane.xlu2 %115 }
  0x8c   :  { %v136_v49 = vmax.f32 %v134_v42, %v135_v45  ;;  %v167_v50 = vsel %vm117_vm1, %v116_v48, -inf  ;;  %v88_v51 = vpop.xlane.xlu0 %87 }
  0x8d   :  { %v165_v52 = vrot.slane %v164_v46, 1  ;;  %v122_v53 = vmax.f32 %v120_v44, %v121_v47  ;;  %v168_v54 = vrot.slane %v167_v50, 4  ;;  %v139_v55 = vsel %vm117_vm1, %v88_v51, -inf  ;;  %v74_v56 = vpop.xlane.xlu1 %73 }
  0x8e   :  { %v137_v57 = vrot.slane %v136_v49, 1  ;;  %v140_v58 = vrot.slane %v139_v55, 4  ;;  %v125_v59 = vsel %vm117_vm1, %v74_v56, -inf }
  0x8f   :  { %v166_v60 = vmax.f32 %v164_v46, %v165_v52  ;;  %v123_v61 = vrot.slane %v122_v53, 1  ;;  %v169_v62 = vmax.f32 %v167_v50, %v168_v54  ;;  %v126_v63 = vrot.slane %v125_v59, 4 }
  0x90   :  { %v138_v0 = vmax.f32 %v136_v49, %v137_v57  ;;  %v141_v1 = vmax.f32 %v139_v55, %v140_v58 }
  0x91   :  { %v180_v2 = vsub.f32 %v109_v32, %v166_v60  ;;  %v124_v3 = vmax.f32 %v122_v53, %v123_v61  ;;  %v170_v4 = vrot.slane %v169_v62, 2  ;;  %v127_v5 = vmax.f32 %v125_v59, %v126_v63 }
  0x92   :  { %v176_v6 = vsub.f32 %v81_v34, %v138_v0  ;;  %v142_v7 = vrot.slane %v141_v1, 2 }
  0x93   :  { %v194_v8 = vmul.f32 1.442695, %v180_v2  ;;  %v174_v9 = vsub.f32 %v67_v37, %v124_v3  ;;  %v171_v10 = vmax.f32 %v169_v62, %v170_v4  ;;  %v128_v11 = vrot.slane %v127_v5, 2 }
  0x94   :  { %v186_v12 = vmul.f32 1.442695, %v176_v6  ;;  %v143_v13 = vmax.f32 %v141_v1, %v142_v7  ;;  %v1040_v14 = vpop.xlane.xlu0 %94 }
  0x95   :  { %888 = vpow2.f32 %v194_v8  ;;  %v182_v15 = vmul.f32 1.442695, %v174_v9  ;;  %v172_v16 = vrot.slane %v171_v10, 1  ;;  %v129_v17 = vmax.f32 %v127_v5, %v128_v11  ;;  %v1042_v18 = vpop.xlane.xlu1 %101 }
  0x96   :  { %890 = vpow2.f32 %v186_v12  ;;  %v144_v19 = vrot.slane %v143_v13, 1  ;;  %v146_v20 = vsel %vm117_vm1, %v1040_v14, -inf  ;;  %v153_v21 = vsel %vm117_vm1, %v1042_v18, -inf }
  0x97   :  { %892 = vpow2.f32 %v182_v15  ;;  %v173_v22 = vmax.f32 %v171_v10, %v172_v16  ;;  %v130_v23 = vrot.slane %v129_v17, 1  ;;  %v147_v24 = vrot.slane %v146_v20, 4 }
  0x98   :  { %v145_v25 = vmax.f32 %v143_v13, %v144_v19  ;;  %v154_v26 = vrot.slane %v153_v21, 4 }
  0x99   :  { %v181_v27 = vsub.f32 %v116_v48, %v173_v22  ;;  %v131_v28 = vmax.f32 %v129_v17, %v130_v23  ;;  %v148_v29 = vmax.f32 %v146_v20, %v147_v24 }
  0x9a   :  { %v177_v30 = vsub.f32 %v88_v51, %v145_v25  ;;  %v155_v31 = vmax.f32 %v153_v21, %v154_v26 }
  0x9b   :  { %v1048_v32 = vpop.eup %888  ;;  %v196_v33 = vmul.f32 1.442695, %v181_v27  ;;  %v175_v34 = vsub.f32 %v74_v56, %v131_v28  ;;  %v149_v35 = vrot.slane %v148_v29, 2 }
  0x9c   :  { %v1050_v36 = vpop.eup %890  ;;  %v240_v37 = vsel %vm117_vm1, %v1048_v32, 0.0  ;;  %v188_v38 = vmul.f32 1.442695, %v177_v30  ;;  %v156_v39 = vrot.slane %v155_v31, 2 }
  0x9d   :  { %v1054_v40 = vpop.eup %892  ;;  %v241_v41 = vrot.slane %v240_v37, 4  ;;  %v212_v42 = vsel %vm117_vm1, %v1050_v36, 0.0  ;;  %894 = vpow2.f32 %v196_v33  ;;  %v184_v43 = vmul.f32 1.442695, %v175_v34 }
  0x9e   :  { %v213_v44 = vrot.slane %v212_v42, 4  ;;  %v198_v45 = vsel %vm117_vm1, %v1054_v40, 0.0  ;;  %896 = vpow2.f32 %v188_v38  ;;  %v150_v46 = vmax.f32 %v148_v29, %v149_v35 }
  0x9f   :  { %v242_v47 = vadd.f32 %v241_v41, %v240_v37  ;;  %v199_v48 = vrot.slane %v198_v45, 4  ;;  %898 = vpow2.f32 %v184_v43  ;;  %v157_v49 = vmax.f32 %v155_v31, %v156_v39 }
  0xa0   :  { %v214_v50 = vadd.f32 %v213_v44, %v212_v42  ;;  %v151_v51 = vrot.slane %v150_v46, 1 }
  0xa1   :  { %v243_v52 = vrot.slane %v242_v47, 2  ;;  %v200_v53 = vadd.f32 %v199_v48, %v198_v45  ;;  %v158_v54 = vrot.slane %v157_v49, 1 }
  0xa2   :  { %v215_v55 = vrot.slane %v214_v50, 2  ;;  %v152_v56 = vmax.f32 %v150_v46, %v151_v51 }
  0xa3   :  { %v1060_v57 = vpop.eup %894  ;;  %v244_v58 = vadd.f32 %v243_v52, %v242_v47  ;;  %v201_v59 = vrot.slane %v200_v53, 2  ;;  %v159_v0 = vmax.f32 %v157_v49, %v158_v54 }
  0xa4   :  { %v1062_v60 = vpop.eup %896  ;;  %v216_v61 = vadd.f32 %v215_v55, %v214_v50  ;;  %v247_v62 = vsel %vm117_vm1, %v1060_v57, 0.0  ;;  %v178_v63 = vsub.f32 %v1040_v14, %v152_v56 }
  0xa5   :  { %v1067_v1 = vpop.eup %898  ;;  %v245_v2 = vrot.slane %v244_v58, 1  ;;  %v202_v3 = vadd.f32 %v201_v59, %v200_v53  ;;  %v248_v4 = vrot.slane %v247_v62, 4  ;;  %v219_v5 = vsel %vm117_vm1, %v1062_v60, 0.0 }
  0xa6   :  { %v217_v6 = vrot.slane %v216_v61, 1  ;;  %v220_v7 = vrot.slane %v219_v5, 4  ;;  %v205_v8 = vsel %vm117_vm1, %v1067_v1, 0.0  ;;  %v190_v9 = vmul.f32 1.442695, %v178_v63 }
  0xa7   :  { %v1073_v10 = vadd.f32 %v245_v2, %v244_v58  ;;  %v203_v11 = vrot.slane %v202_v3, 1  ;;  %v249_v12 = vadd.f32 %v248_v4, %v247_v62  ;;  %v206_v13 = vrot.slane %v205_v8, 4 }
  0xa8   :  { %v1075_v14 = vadd.f32 %v217_v6, %v216_v61  ;;  %v221_v15 = vadd.f32 %v220_v7, %v219_v5  ;;  %900 = vpow2.f32 %v190_v9  ;;  %v179_v16 = vsub.f32 %v1042_v18, %v159_v0 }
  0xa9   :  { %902 = vrcp.f32 %v1073_v10  ;;  %v1079_v17 = vadd.f32 %v203_v11, %v202_v3  ;;  %v250_v19 = vrot.slane %v249_v12, 2  ;;  %v207_v20 = vadd.f32 %v206_v13, %v205_v8 }
  0xaa   :  { %904 = vrcp.f32 %v1075_v14  ;;  %v222_v21 = vrot.slane %v221_v15, 2  ;;  %v192_v22 = vmul.f32 1.442695, %v179_v16  ;;  %v291_v18 = vand.u32 2147483647, %v1075_v14 }
  0xab   :  { %906 = vrcp.f32 %v1079_v17  ;;  %v251_v23 = vadd.f32 %v250_v19, %v249_v12  ;;  %v208_v24 = vrot.slane %v207_v20, 2  ;;  %v293_v30 = vand.u32 2147483648, %v1075_v14 }
  0xac   :  { %v223_v25 = vadd.f32 %v222_v21, %v221_v15  ;;  %908 = vpow2.f32 %v192_v22  ;;  %vm287_vm2 = vweird.f32 %v1075_v14  ;;  %vm259_vm3 = vweird.f32 %v1079_v17 }
  0xad   :  { %v252_v26 = vrot.slane %v251_v23, 1  ;;  %v209_v27 = vadd.f32 %v208_v24, %v207_v20  ;;  %v263_v39 = vand.u32 2147483647, %v1079_v17  ;;  %vm1101_vm4 = vcmp.eq.f32.partialorder %v291_v18, 8.507059e+37 }
  0xae   :  { %v1084_v28 = vpop.eup %900  ;;  %v224_v29 = vrot.slane %v223_v25, 1  ;;  %v294_v48 = vor.u32 1.1754944e-38, %v293_v30  ;;  %v265_v52 = vand.u32 2147483648, %v1079_v17  ;;  %vm343_vm12 = vweird.f32 %v1073_v10 }
  0xaf   :  { %v1087_v31 = vpop.eup %902  ;;  %v210_v33 = vrot.slane %v209_v27, 1  ;;  %v226_v34 = vsel %vm117_vm1, %v1084_v28, 0.0  ;;  %v1096_v42 = vadd.f32 %v252_v26, %v251_v23  ;;  %vm1113_vm5 = vcmp.eq.f32.partialorder %v263_v39, 8.507059e+37 }
  0xb0   :  { %v905_v35 = vpop.eup %904  ;;  %v1092_v37 = vadd.f32 %v224_v29, %v223_v25  ;;  %v227_v38 = vrot.slane %v226_v34, 4  ;;  %v339_v59 = vmul.f32 %v1087_v31, %v1073_v10  ;;  %v266_v2 = vor.u32 1.1754944e-38, %v265_v52 }
  0xb1   :  { %v907_v41 = vpop.eup %906  ;;  %v1098_v43 = vadd.f32 %v210_v33, %v209_v27  ;;  %v283_v44 = vmul.f32 %v905_v35, %v1075_v14  ;;  %vm288_vm6 = vweird.f32 %v905_v35  ;;  %vm344_vm15 = vweird.f32 %v1087_v31 }
  0xb2   :  { %v1105_v46 = vpop.eup %908  ;;  %910 = vrcp.f32 %v1092_v37  ;;  %v228_v47 = vadd.f32 %v227_v38, %v226_v34  ;;  %v255_v49 = vmul.f32 %v907_v41, %v1079_v17  ;;  %vm260_vm7 = vweird.f32 %v907_v41  ;;  %vm289_vm9 = vmor %vm287_vm2, %vm288_vm6 }
  0xb3   :  { %912 = vrcp.f32 %v1098_v43  ;;  %v233_v50 = vsel %vm117_vm1, %v1105_v46, 0.0  ;;  %v284_v51 = vsub.f32 1.0, %v283_v44  ;;  %vm301_vm8 = vweird.f32 %v1092_v37  ;;  %vm261_vm10 = vmor %vm259_vm3, %vm260_vm7 }
  0xb4   :  { %v229_v53 = vrot.slane %v228_v47, 2  ;;  %v234_v54 = vrot.slane %v233_v50, 4  ;;  %v256_v55 = vsub.f32 1.0, %v255_v49  ;;  %914 = vrcp.f32 %v1096_v42 }
  0xb5   :  { %v285_v58 = vmul.f32 %v905_v35, %v284_v51  ;;  %v305_v3 = vand.u32 2147483647, %v1092_v37  ;;  %v307_v8 = vand.u32 2147483648, %v1092_v37  ;;  %vm273_vm11 = vweird.f32 %v1098_v43 }
  0xb6   :  { %v230_v61 = vadd.f32 %v229_v53, %v228_v47  ;;  %v235_v62 = vadd.f32 %v234_v54, %v233_v50  ;;  %v257_v63 = vmul.f32 %v907_v41, %v256_v55  ;;  %v340_v13 = vsub.f32 1.0, %v339_v59 }
  0xb7   :  { %v286_v0 = vadd.f32 %v905_v35, %v285_v58  ;;  %v277_v26 = vand.u32 2147483647, %v1098_v43  ;;  %v279_v30 = vand.u32 2147483648, %v1098_v43  ;;  %vm306_vm2 = vcmp.eq.f32.partialorder %v305_v3, 8.507059e+37 }
  0xb8   :  { %v911_v4 = vpop.eup %910  ;;  %v231_v5 = vrot.slane %v230_v61, 1  ;;  %v236_v6 = vrot.slane %v235_v62, 2  ;;  %v258_v7 = vadd.f32 %v907_v41, %v257_v63  ;;  %v341_v29 = vmul.f32 %v1087_v31, %v340_v13 }
  0xb9   :  { %v913_v9 = vpop.eup %912  ;;  %v290_v11 = vsel %vm289_vm9, %v905_v35, %v286_v0  ;;  %v297_v12 = vmul.f32 %v911_v4, %v1092_v37  ;;  %vm302_vm13 = vweird.f32 %v911_v4  ;;  %v308_v38 = vor.u32 1.1754944e-38, %v307_v8 }
  0xba   :  { %v1130_v15 = vadd.f32 %v231_v5, %v230_v61  ;;  %v237_v16 = vadd.f32 %v236_v6, %v235_v62  ;;  %v295_v14 = vsel %vm1101_vm4, %v294_v48, %v290_v11  ;;  %v262_v19 = vsel %vm261_vm10, %v907_v41, %v258_v7  ;;  %v1134_v20 = vpop.eup %914  ;;  %vm303_vm1 = vmor %vm301_vm8, %vm302_vm13 }
  0xbb   :  { %v368_v21 = vmul.f32 %v1050_v36, %v295_v14  ;;  %v267_v17 = vsel %vm1113_vm5, %v266_v2, %v262_v19  ;;  %v298_v22 = vsub.f32 1.0, %v297_v12  ;;  %v269_v23 = vmul.f32 %v913_v9, %v1098_v43  ;;  %vm1159_vm5 = vmor %vm343_vm12, %vm344_vm15 }
  0xbc   :  { %916 = vrcp.f32 %v1130_v15  ;;  %v238_v24 = vrot.slane %v237_v16, 1  ;;  %v366_v25 = vmul.f32 %v1054_v40, %v267_v17  ;;  %vm274_vm14 = vweird.f32 %v913_v9 }
  0xbd   :  { %485 = vxpose.xlu2.b32.start.end [1/1] (short) (narrow) %v368_v21, 8  ;;  %v299_v27 = vmul.f32 %v911_v4, %v298_v22  ;;  %v270_v18 = vsub.f32 1.0, %v269_v23  ;;  %v353_v33 = vmul.f32 %v1134_v20, %v1096_v42  ;;  %v342_v40 = vadd.f32 %v1087_v31, %v341_v29  ;;  %vm275_vm3 = vmor %vm273_vm11, %vm274_vm14 }
  0xbe   :  { %v1144_v36 = vadd.f32 %v238_v24, %v237_v16  ;;  %374 = vxpose.xlu1.b32.start.end [1/1] (short) (narrow) %v366_v25, 8  ;;  %vm278_vm4 = vcmp.eq.f32.partialorder %v277_v26, 8.507059e+37  ;;  %v349_v45 = vand.u32 2147483648, %v1073_v10  ;;  %v280_v49 = vor.u32 1.1754944e-38, %v279_v30 }
  0xbf   :  { %v300_v34 = vadd.f32 %v911_v4, %v299_v27  ;;  %v271_v35 = vmul.f32 %v913_v9, %v270_v18  ;;  %v354_v39 = vsub.f32 1.0, %v353_v33  ;;  %v347_v37 = vand.u32 2147483647, %v1073_v10 }
  0xc0   :  { %918 = vrcp.f32 %v1144_v36  ;;  %v346_v53 = vsel %vm1159_vm5, %v1087_v31, %v342_v40  ;;  %vm358_vm6 = vweird.f32 %v1134_v20  ;;  %v363_v56 = vand.u32 2147483648, %v1096_v42 }
  0xc1   :  { %v304_v41 = vsel %vm303_vm1, %v911_v4, %v300_v34  ;;  %v272_v44 = vadd.f32 %v913_v9, %v271_v35  ;;  %v355_v51 = vmul.f32 %v1134_v20, %v354_v39  ;;  %v350_v59 = vor.u32 1.1754944e-38, %v349_v45 }
  0xc2   :  { %v917_v47 = vpop.eup %916  ;;  %v309_v48 = vsel %vm306_vm2, %v308_v38, %v304_v41  ;;  %vm357_vm7 = vweird.f32 %v1096_v42  ;;  %vm348_vm8 = vcmp.eq.f32.partialorder %v347_v37, 8.507059e+37  ;;  %v364_v2 = vor.u32 1.1754944e-38, %v363_v56 }
  0xc3   :  { %v369_v52 = vmul.f32 %v1062_v60, %v309_v48  ;;  %v276_v43 = vsel %vm275_vm3, %v913_v9, %v272_v44  ;;  %v356_v55 = vadd.f32 %v1134_v20, %v355_v51  ;;  %v311_v58 = vmul.f32 %v917_v47, %v1130_v15  ;;  %vm359_vm9 = vmor %vm357_vm7, %vm358_vm6 }
  0xc4   :  { %v281_v54 = vsel %vm278_vm4, %v280_v49, %v276_v43  ;;  %v361_v60 = vand.u32 2147483647, %v1096_v42  ;;  %v351_v62 = vsel %vm348_vm8, %v350_v59, %v346_v53  ;;  %vm316_vm11 = vweird.f32 %v917_v47 }
  0xc5   :  { %540 = vxpose.xlu0.b32.start.end [1/1] (short) (narrow) %v369_v52, 8  ;;  %v367_v10 = vmul.f32 %v1067_v1, %v281_v54  ;;  %v312_v31 = vsub.f32 1.0, %v311_v58  ;;  %v360_v63 = vsel %vm359_vm9, %v1134_v20, %v356_v55  ;;  %v372_v4 = vmul.f32 %v1048_v32, %v351_v62 }
  0xc6   :  { %v919_v61 = vpop.eup %918  ;;  %vm362_vm10 = vcmp.eq.f32.partialorder %v361_v60, 8.507059e+37  ;;  %v321_v42 = vand.u32 2147483648, %v1130_v15  ;;  %vm315_vm12 = vweird.f32 %v1130_v15  ;;  %v319_v7 = vand.u32 2147483647, %v1130_v15 }
  0xc7   :  { %430 = vxpose.xlu2.b32.start.end [1/1] (short) (narrow) %v367_v10, 8  ;;  %v325_v0 = vmul.f32 %v919_v61, %v1144_v36  ;;  %v313_v3 = vmul.f32 %v917_v47, %v312_v31  ;;  %v365_v5 = vsel %vm362_vm10, %v364_v2, %v360_v63  ;;  %vm330_vm13 = vweird.f32 %v919_v61  ;;  %vm317_vm14 = vmor %vm315_vm12, %vm316_vm11 }
  0xc8   :  { %vm329_vm15 = vweird.f32 %v1144_v36  ;;  %v335_v9 = vand.u32 2147483648, %v1144_v36  ;;  %v373_v11 = vmul.f32 %v1060_v57, %v365_v5  ;;  %v333_v13 = vand.u32 2147483647, %v1144_v36 }
  0xc9   :  { %v326_v1 = vsub.f32 1.0, %v325_v0  ;;  %v314_v6 = vadd.f32 %v917_v47, %v313_v3  ;;  %v322_v16 = vor.u32 1.1754944e-38, %v321_v42  ;;  %vm331_vm1 = vmor %vm329_vm15, %vm330_vm13  ;;  %vm320_vm2 = vcmp.eq.f32.partialorder %v319_v7, 8.507059e+37 }
  0xca   :  { %v336_v19 = vor.u32 1.1754944e-38, %v335_v9  ;;  %vm334_vm3 = vcmp.eq.f32.partialorder %v333_v13, 8.507059e+37  ;;  %vm406_vm4 = vcmask 64512   ;;  %vm824_vm5 = vcmask 1041409  }
  0xcb   :  { %v327_v8 = vmul.f32 %v919_v61, %v326_v1  ;;  %v318_v12 = vsel %vm317_vm14, %v917_v47, %v314_v6  ;;  %vm827_vm6 = vcmask 1042434   ;;  %vm830_vm7 = vcmask 1043459  }
  0xcc   :  { %v323_v15 = vsel %vm320_vm2, %v322_v16, %v318_v12  ;;  %vm833_vm8 = vcmask 1044484   ;;  %vm836_vm9 = vcmask 1045509   ;;  %vm839_vm10 = vcmask 1046534  }
  0xcd   :  { %705 = vxpose.xlu0.b32.start.end [1/1] (short) (narrow) %v372_v4, 8  ;;  %v328_v32 = vadd.f32 %v919_v61, %v327_v8  ;;  %v370_v21 = vmul.f32 %v1084_v28, %v323_v15  ;;  %vm842_vm11 = vcmask 1047559  }
  0xcf   :  { %760 = vxpose.xlu2.b32.start.end [1/1] (short) (narrow) %v373_v11, 8  ;;  %v332_v14 = vsel %vm331_vm1, %v919_v61, %v328_v32 }
  0xd0   :  { %v337_v20 = vsel %vm334_vm3, %v336_v19, %v332_v14 }
  0xd1   :  { %v371_v17 = vmul.f32 %v1105_v46, %v337_v20 }
  0xd5   :  { %595 = vxpose.xlu0.b32.start.end [1/1] (short) (narrow) %v370_v21, 8 }
  0xd7   :  { %650 = vxpose.xlu2.b32.start.end [1/1] (short) (narrow) %v371_v17, 8 }
 0x156   :  { %v501_v57 = vpop.trf.xlu2 }
 0x157   :  { %866 = vmatmul.msk.f32.vlgmr.msra.gmra.mxu2 %vm406_vm4, %v501_v57 }
 0x160   :  { %v446_v22 = vpop.trf.xlu2 }
 0x161   :  { %865 = vmatmul.msk.f32.vlgmr.msra.gmra.mxu1 %vm406_vm4, %v446_v22 }
 0x162   :  { %v390_v23 = vpop.trf.xlu1 }
 0x163   :  { %864 = vmatmul.msk.f32.vlgmr.msra.gmra.mxu0 %vm406_vm4, %v390_v23 }
 0x168   :  { %v776_v24 = vpop.trf.xlu2 }
 0x169   :  { %v556_v25 = vpop.trf.xlu0 }
 0x16a   :  { %867 = vmatmul.msk.f32.vlgmr.msra.gmra.mxu3 %vm406_vm4, %v556_v25 }
 0x170   :  { %v666_v26 = vpop.trf.xlu2 }
 0x171   :  { %v721_v28 = vpop.trf.xlu0  ;;  %869 = vmatmul.msk.f32.vlgmr.msrb.gmra.mxu1 %vm406_vm4, %v666_v26 }
 0x172   :  { %870 = vmatmul.msk.f32.vlgmr.msrb.gmra.mxu2 %vm406_vm4, %v721_v28  ;;  %871 = vmatmul.msk.f32.vlgmr.msrb.gmra.mxu3 %vm406_vm4, %v776_v24 }
 0x179   :  { %v611_v46 = vpop.trf.xlu0 }
 0x17a   :  { %868 = vmatmul.msk.f32.vlgmr.msrb.gmra.mxu0 %vm406_vm4, %v611_v46 }
 0x1da   :  { %v537_v29 = vpop.f32.mrf.mxu2 }
 0x1db   :  { %v826_v33 = vrot.slane %v537_v29, 6 }
 0x1de   :  { %v482_v27 = vpop.f32.mrf.mxu1 }
 0x1df   :  { %v823_v30 = vrot.slane %v482_v27, 7 }
 0x1e0   :  { %v427_v36 = vpop.f32.mrf.mxu0 }
 0x1e1   :  { %v825_v35 = vsel %vm824_vm5, %v823_v30, %v427_v36 }
 0x1e2   :  { %v828_v44 = vsel %vm827_vm6, %v826_v33, %v825_v35 }
 0x1ed   :  { %v592_v18 = vpop.f32.mrf.mxu3 }
 0x1ee   :  { %v702_v34 = vpop.f32.mrf.mxu1  ;;  %v829_v40 = vrot.slane %v592_v18, 5 }
 0x1ef   :  { %v835_v41 = vrot.slane %v702_v34, 3 }
 0x1f0   :  { %v831_v48 = vsel %vm830_vm7, %v829_v40, %v828_v44 }
 0x1f5   :  { %v757_v38 = vpop.f32.mrf.mxu2  ;;  %v812_v45 = vpop.f32.mrf.mxu3 }
 0x1f6   :  { %v838_v49 = vrot.slane %v757_v38, 2  ;;  %v841_v37 = vrot.slane %v812_v45, 1 }
 0x1f7   :  { %v647_v39 = vpop.f32.mrf.mxu0 }
 0x1f8   :  { %v832_v47 = vrot.slane %v647_v39, 4 }
 0x1fa   :  { %v834_v50 = vsel %vm833_vm8, %v832_v47, %v831_v48 }
 0x1fb   :  { %v837_v51 = vsel %vm836_vm9, %v835_v41, %v834_v50 }
 0x1fc   :  { %v840_v52 = vsel %vm839_vm10, %v838_v49, %v837_v51 }
 0x1fd   :  { %v843_v43 = vsel %vm842_vm11, %v841_v37, %v840_v52 }
 0x1fe   :  { %845 = vst.msk [vmem:[#allocation7] sm:$0xff] %vm64_vm0, %v843_v43 }
 0x1ff   :  { %856 = dma.vmem_to_hbm [thread:$0]  %s852_s1, 128, %s854_s25, [#allocation4]  }
 0x200   :  { %996 = dma.done.wait [#allocation4], 128  }
 0x201   :  { %997 = vsyncadd [#allocation4], 4294967168 }
 0x202   :  { %861 = vsyncpa [#allocation3], 1 }
 0x203   :  { %862 = vsyncpa [#allocation6], 1 }
 0x204   :  { %863 = vsyncpa [#allocation4], 1 }

</bundles_post_ra>
